<compile_context>
chip_gen: v6e
topology: v6e:2x2x1
jax: 0.10.0
libtpu: 0.0.40
codegen_flags: <defaults>
</compile_context>

<pallas_src>
import jax
import jax.numpy as jnp
from jax.experimental import pallas as pl
from jax.experimental.pallas import tpu as pltpu


def _scale_anchors_kernel(anchors_ref, scalings_ref, out_ref):
    # anchors_ref : VMEM (1, nl*na*2) f32  -- flattened anchors, lane-dense row
    # scalings_ref: VMEM (1, nl*na*2) f32  -- per-element scaling (pre-broadcast)
    # out_ref     : VMEM (1, nl*na*2) f32
    # Single whole-ref elementwise divide: one load pair, one VPU/EUP divide,
    # one store.  No loops, no scalar->vector broadcast chain, no masking
    # beyond the unavoidable <128-lane row.
    out_ref[...] = anchors_ref[...] / scalings_ref[...]


@jax.jit
def scale_anchors_pallas(anchors: jax.Array, scalings: jax.Array) -> jax.Array:
    """Pallas equivalent of MetaModelDetect.scale_anchors().

    anchors : (nl, na, 2) float32
    scalings: (nl,)       float32
    returns : (nl, na, 2) float32 == anchors / scalings[:, None, None]
    """
    nl, na, two = anchors.shape
    flat = nl * na * two

    a_row = anchors.astype(jnp.float32).reshape(1, flat)
    # Broadcast per-level scalings to a per-element row.  This (and the
    # reshapes) fuse into the jit region around the custom call.
    s_row = jnp.broadcast_to(
        scalings.astype(jnp.float32)[:, None], (nl, na * two)
    ).reshape(1, flat)

    out_row = pl.pallas_call(
        _scale_anchors_kernel,
        out_shape=jax.ShapeDtypeStruct((1, flat), jnp.float32),
        in_specs=[
            pl.BlockSpec(memory_space=pltpu.MemorySpace.VMEM),  # anchors row
            pl.BlockSpec(memory_space=pltpu.MemorySpace.VMEM),  # scalings row
        ],
        out_specs=pl.BlockSpec(memory_space=pltpu.MemorySpace.VMEM),
    )(a_row, s_row)

    return out_row.reshape(nl, na, two)


class MetaModelDetectPallas:
    """JAX/Pallas mirror of the MetaModelDetect base class."""

    def __init__(self):
        self.inc = None
        self.nc = None
        self.anchors = None
        self.nl = None
        self.na = None
        self.image_size = None
        self.scalings = None
        self.decode = False
        self.reshape = False

    def get_register_anchors(self, anchors):
        anchors = jnp.asarray(anchors, dtype=jnp.float32)
        nl, na = anchors.shape[0:2]
        self.anchors = anchors  # register_buffer equivalent
        self.nl, self.na = nl, na
        return anchors, nl, na

    def get_register_scalings(self, image_size, scalings):
        # TODO(synk): the real method derives scalings from
        # self._forward_alone(zeros image), which is abstract here; scalings
        # are supplied directly instead of being computed from the abstract
        # forward pass.
        self.image_size = jnp.asarray(image_size, dtype=jnp.float32)
        self.scalings = jnp.asarray(scalings, dtype=jnp.float32)
        return self.scalings, self.image_size

    def scale_anchors(self):
        """For anchor method but anchor free method (Pallas hot path).

        Matches PyTorch semantics: every call divides the registered anchor
        buffer by the registered scalings again.
        """
        self.anchors = scale_anchors_pallas(self.anchors, self.scalings)
        return self.anchors

    def forward(self, x):
        raise NotImplementedError  # abstract in the PyTorch module as well

    def _forward_alone(self, x):
        raise NotImplementedError

    def initialize_weights(self):
        raise NotImplementedError

    def decode_outputs(self, x, scalings=None, reshape=True):
        raise NotImplementedError


if __name__ == "__main__":
    key = jax.random.PRNGKey(0)
    nl, na = 3, 3  # 3 detection levels, 3 anchors per level, (w, h) pairs

    # Deterministic synthetic anchors (no checkpoint load) and typical strides.
    anchors = jax.random.uniform(key, (nl, na, 2), jnp.float32, 2.0, 10.0)
    scalings = jnp.array([8.0, 16.0, 32.0], dtype=jnp.float32)

    model = MetaModelDetectPallas()
    model.inc = 3
    model.get_register_anchors(anchors)
    model.get_register_scalings(64, scalings)

    out = model.scale_anchors()
    out = jax.block_until_ready(out)

    ref = anchors / scalings[:, None, None]
    assert out.shape == (nl, na, 2)
    assert jnp.allclose(out, ref, atol=1e-6, rtol=1e-6)

    # Second call divides again (exactly as the PyTorch module would).
    out2 = jax.block_until_ready(model.scale_anchors())
    ref2 = ref / scalings[:, None, None]
    assert jnp.allclose(out2, ref2, atol=1e-6, rtol=1e-6)

    print("KERNEL_OK")
</pallas_src>

<mosaic_0001>
module attributes {stable_mosaic.version = 11 : i64} {
  func.func @_scale_anchors_kernel(%arg0: memref<1x18xf32, #tpu.memory_space<vmem>>, %arg1: memref<1x18xf32, #tpu.memory_space<vmem>>, %arg2: memref<1x18xf32, #tpu.memory_space<vmem>>) attributes {dimension_semantics = [], scalar_prefetch = 0 : i64, scratch_operands = 0 : i64, tpu.core_type = #tpu.core_type<tc>} {
    %c0 = arith.constant 0 : index
    %c0_0 = arith.constant 0 : index
    %0 = vector.load %arg0[%c0, %c0_0] : memref<1x18xf32, #tpu.memory_space<vmem>>, vector<1x18xf32>
    %c0_1 = arith.constant 0 : index
    %c0_2 = arith.constant 0 : index
    %1 = vector.load %arg1[%c0_1, %c0_2] : memref<1x18xf32, #tpu.memory_space<vmem>>, vector<1x18xf32>
    %2 = arith.divf %0, %1 : vector<1x18xf32>
    %c0_3 = arith.constant 0 : index
    %c0_4 = arith.constant 0 : index
    %3 = vector.load %arg2[%c0_3, %c0_4] : memref<1x18xf32, #tpu.memory_space<vmem>>, vector<1x18xf32>
    tpu.vector_store %arg2[%c0_3, %c0_4], %2 {strides = array<i32>} : memref<1x18xf32, #tpu.memory_space<vmem>>, vector<1x18xf32>,
    return
  }
}

</mosaic_0001>

<bundles_post_ra>
// kernel: scale_anchors_pallas.1
= control target key start
LH: loop header
LB: loop body
LE: loop exit
PB: predicated region body
PF: predicated region fallthrough
CT: control target
= control target key end

     0   :  { %vm15_vm0 = vcmask 139264   ;;  %s47_s1 = inlined_call_operand.vmem [shape: f32[1,18], index: 1, kind: input, shape index: {}]   ;;  %s48_s0 = inlined_call_operand.vmem [shape: f32[1,18], index: 0, kind: input, shape index: {}]   ;;  %s49_s2 = inlined_call_operand.vmem [shape: f32[1,18], index: 2, kind: output, shape index: {}]  }
   0x1   :  { %v12_v0 = vld [vmem:[%s47_s1] sm:$0x1] }
   0x2   :  { %21 = vrcp.f32 %v12_v0  ;;  %v11_v1 = vld [vmem:[%s48_s0] sm:$0x1] }
   0xf   :  { %v22_v2 = vpop.eup %21 }
  0x10   :  { %v14_v3 = vmul.f32 %v22_v2, %v11_v1 }
  0x12   :  { %16 = vst.msk [vmem:[%s49_s2] sm:$0x1] %vm15_vm0, %v14_v3 }

</bundles_post_ra>
